<compile_context>
chip_gen: v5e
topology: v5e:2x2
jax: 0.10.0
libtpu: 0.0.40
codegen_flags: <defaults>
</compile_context>

<pallas_src>
import functools
import math

import jax
import jax.numpy as jnp
from jax.experimental import pallas as pl
from jax.experimental.pallas import tpu as pltpu


def _gvp_kernel(s_ref, v_ref, wh_ref, ws_s_ref, ws_v_ref, bs_ref, wv_ref,
                perm_ref, s_out_ref, v_out_ref, *, h, vo, eps):
    f32 = jnp.float32
    s = s_ref[...].astype(f32)                  # (TN, si)
    v = v_ref[...].astype(f32)                  # (TN, 3*vi)  lane = 3*c + d

    # vh in planar [x | y | z] layout with ONE MXU matmul: the torch
    # transpose(v, -1, -2) is folded into the block-diagonal weight Wh_big.
    vh = jnp.dot(v, wh_ref[...], preferred_element_type=f32)        # (TN, 3h)

    # _norm_no_nan over the spatial axis: sqrt(clamp(x^2 + y^2 + z^2, eps)).
    sq = vh * vh
    vn = jnp.sqrt(jnp.maximum(
        sq[:, 0:h] + sq[:, h:2 * h] + sq[:, 2 * h:3 * h], eps))      # (TN, h)

    # s = relu(ws(cat([s, vn])))  (ws weight pre-split into its two halves).
    s_out = (jnp.dot(s, ws_s_ref[...], preferred_element_type=f32)
             + jnp.dot(vn, ws_v_ref[...], preferred_element_type=f32)
             + bs_ref[...].astype(f32))
    s_out_ref[...] = jnp.maximum(s_out, 0.0).astype(s_out_ref.dtype)

    # v = wv(vh) in planar layout; gate = sigmoid(||v||) (vector_gate=False).
    vp = jnp.dot(vh, wv_ref[...], preferred_element_type=f32)        # (TN, 3vo)
    sp = vp * vp
    norm = jnp.sqrt(jnp.maximum(
        sp[:, 0:vo] + sp[:, vo:2 * vo] + sp[:, 2 * vo:3 * vo], eps))  # (TN, vo)
    gate = pl.reciprocal(1.0 + jnp.exp(-norm), approx=True)          # sigmoid
    vg = vp * jnp.concatenate([gate, gate, gate], axis=-1)           # (TN, 3vo)

    # Planar [x|y|z] -> interleaved channel-major (.., vo, 3) order via a 0/1
    # permutation matmul, so the HBM output layout matches torch directly and
    # no wrapper-side transpose pass is needed.
    v_out_ref[...] = jnp.dot(vg, perm_ref[...],
                             preferred_element_type=f32).astype(v_out_ref.dtype)


def gvp_forward(s, v, wh, ws_w, ws_b, wv, *, eps=1e-8, tile_n=1024):
    """GVP forward (vi>0, vo>0, vector_gate=False, relu/sigmoid activations).

    s:    (..., si)      scalar features (f32 or bf16; I/O dtype preserved)
    v:    (..., vi, 3)   vector features
    wh:   (h, vi)        torch Linear weight (no bias)
    ws_w: (so, si + h)   torch Linear weight     ws_b: (so,) bias
    wv:   (vo, h)        torch Linear weight (no bias)
    returns (s_out (..., so), v_out (..., vo, 3)), same dtype as `s`.
    """
    lead = s.shape[:-1]
    si = s.shape[-1]
    vi = v.shape[-2]
    h = wh.shape[0]
    so = ws_w.shape[0]
    vo = wv.shape[0]
    assert v.shape[-1] == 3 and v.shape[:-2] == lead
    assert ws_w.shape[1] == si + h and wv.shape[1] == h

    n = math.prod(lead) if lead else 1
    io_dtype = s.dtype
    f32 = jnp.float32

    # Free reshapes only — no transpose / pad HBM passes around the kernel.
    s2 = s.reshape(n, si)
    v2 = v.reshape(n, vi * 3)            # flat lane index = 3*c + d (c=chan, d=xyz)

    # Static weight prep (tiny, trace-time): fold the spatial-axis transpose
    # into block-diagonal weights and build the planar->interleaved permuter.
    eye3 = jnp.eye(3, dtype=f32)
    # Wh_big[3c+d, d*h+j] = wh[j, c]   ->  vh_planar = v_flat @ Wh_big
    wh_big = jnp.einsum('cj,de->cdej', wh.T.astype(f32), eye3).reshape(3 * vi, 3 * h)
    # Wv_big[d*h+j, d*vo+k] = wv[k, j] ->  vpre_planar = vh_planar @ Wv_big
    wv_big = jnp.einsum('jk,de->djek', wv.T.astype(f32), eye3).reshape(3 * h, 3 * vo)
    # perm[d*vo+c, 3c+d] = 1           ->  planar -> interleaved (.., vo, 3)
    perm = jnp.einsum('cb,de->dcbe', jnp.eye(vo, dtype=f32), eye3).reshape(3 * vo, 3 * vo)
    ws_s = ws_w[:, :si].T.astype(f32)    # (si, so)   cat order is [s, vn]
    ws_v = ws_w[:, si:].T.astype(f32)    # (h,  so)
    bias = ws_b.reshape(1, so).astype(f32)

    # Node-axis tiling: big tiles (default 1024 rows), ragged tail handled by
    # Pallas bounds clipping (no jnp.pad / output slice).
    tile_n = max(8, (tile_n // 8) * 8)
    tn = n if n <= tile_n else tile_n
    grid = (pl.cdiv(n, tn),)

    kernel = functools.partial(_gvp_kernel, h=h, vo=vo, eps=eps)
    s_out, v_out = pl.pallas_call(
        kernel,
        out_shape=(
            jax.ShapeDtypeStruct((n, so), io_dtype),
            jax.ShapeDtypeStruct((n, vo * 3), io_dtype),
        ),
        grid_spec=pltpu.PrefetchScalarGridSpec(
            num_scalar_prefetch=0,
            grid=grid,
            in_specs=[
                pl.BlockSpec((tn, si), lambda i: (i, 0)),           # s
                pl.BlockSpec((tn, vi * 3), lambda i: (i, 0)),       # v (flat)
                pl.BlockSpec((vi * 3, h * 3), lambda i: (0, 0)),    # Wh_big (resident)
                pl.BlockSpec((si, so), lambda i: (0, 0)),           # Ws, s half
                pl.BlockSpec((h, so), lambda i: (0, 0)),            # Ws, vn half
                pl.BlockSpec((1, so), lambda i: (0, 0)),            # bias
                pl.BlockSpec((h * 3, vo * 3), lambda i: (0, 0)),    # Wv_big
                pl.BlockSpec((vo * 3, vo * 3), lambda i: (0, 0)),   # permuter
            ],
            out_specs=[
                pl.BlockSpec((tn, so), lambda i: (i, 0)),
                pl.BlockSpec((tn, vo * 3), lambda i: (i, 0)),
            ],
        ),
        compiler_params=pltpu.CompilerParams(
            dimension_semantics=("parallel",),
        ),
    )(s2, v2, wh_big, ws_s, ws_v, bias, wv_big, perm)

    return s_out.reshape(*lead, so), v_out.reshape(*lead, vo, 3)


def _reference_gvp(s, v, wh, ws_w, ws_b, wv, eps=1e-8):
    """Pure-JAX replica of the PyTorch GVP.forward (main path)."""
    vt = jnp.swapaxes(v, -1, -2)                                   # (..., 3, vi)
    vh = vt @ wh.T                                                 # (..., 3, h)
    vn = jnp.sqrt(jnp.maximum(jnp.sum(vh * vh, axis=-2), eps))     # (..., h)
    s_out = jnp.concatenate([s, vn], axis=-1) @ ws_w.T + ws_b
    s_out = jnp.maximum(s_out, 0.0)                                # relu
    vv = vh @ wv.T                                                 # (..., 3, vo)
    vv = jnp.swapaxes(vv, -1, -2)                                  # (..., vo, 3)
    g = jnp.sqrt(jnp.maximum(jnp.sum(vv * vv, axis=-1, keepdims=True), eps))
    g = 1.0 / (1.0 + jnp.exp(-g))                                  # sigmoid
    return s_out, vv * g


if __name__ == "__main__":
    key = jax.random.PRNGKey(0)
    batch, seq = 2, 8
    si, vi = 32, 16          # in_dims  = (n_scalar, n_vector)
    so, vo = 32, 16          # out_dims = (n_scalar, n_vector)
    h = max(vi, vo)          # h_dim default

    keys = jax.random.split(key, 8)
    s = jax.random.normal(keys[0], (batch, seq, si), jnp.float32)
    v = jax.random.normal(keys[1], (batch, seq, vi, 3), jnp.float32)

    def init_linear(k, out_d, in_d, bias=True):
        bound = 1.0 / math.sqrt(in_d)
        kw, kb = jax.random.split(k)
        w = jax.random.uniform(kw, (out_d, in_d), jnp.float32, -bound, bound)
        b = (jax.random.uniform(kb, (out_d,), jnp.float32, -bound, bound)
             if bias else None)
        return w, b

    wh, _ = init_linear(keys[2], h, vi, bias=False)
    ws_w, ws_b = init_linear(keys[3], so, h + si, bias=True)
    wv, _ = init_linear(keys[4], vo, h, bias=False)

    # --- f32, single-tile grid --------------------------------------------
    s_out, v_out = jax.block_until_ready(gvp_forward(s, v, wh, ws_w, ws_b, wv))
    s_ref, v_ref = _reference_gvp(s, v, wh, ws_w, ws_b, wv)
    assert s_out.shape == (batch, seq, so)
    assert v_out.shape == (batch, seq, vo, 3)
    assert s_out.dtype == jnp.float32 and v_out.dtype == jnp.float32
    assert jnp.allclose(s_out, s_ref, atol=2e-3, rtol=2e-3), "f32 scalar mismatch"
    assert jnp.allclose(v_out, v_ref, atol=1e-2, rtol=1e-2), "f32 vector mismatch"

    # --- f32, multi-step grid with a ragged final tile (no pad / no slice) --
    n_big = 3000
    s_b = jax.random.normal(keys[5], (1, n_big, si), jnp.float32)
    v_b = jax.random.normal(keys[6], (1, n_big, vi, 3), jnp.float32)
    s_out_b, v_out_b = jax.block_until_ready(
        gvp_forward(s_b, v_b, wh, ws_w, ws_b, wv, tile_n=1024))
    s_ref_b, v_ref_b = _reference_gvp(s_b, v_b, wh, ws_w, ws_b, wv)
    assert jnp.allclose(s_out_b, s_ref_b, atol=2e-3, rtol=2e-3), "ragged scalar mismatch"
    assert jnp.allclose(v_out_b, v_ref_b, atol=1e-2, rtol=1e-2), "ragged vector mismatch"

    # --- bf16 HBM I/O (f32 compute in-kernel) -------------------------------
    s16 = s.astype(jnp.bfloat16)
    v16 = v.astype(jnp.bfloat16)
    s_out16, v_out16 = jax.block_until_ready(
        gvp_forward(s16, v16, wh, ws_w, ws_b, wv))
    s_ref16, v_ref16 = _reference_gvp(s16.astype(jnp.float32),
                                      v16.astype(jnp.float32),
                                      wh, ws_w, ws_b, wv)
    assert s_out16.dtype == jnp.bfloat16 and v_out16.dtype == jnp.bfloat16
    assert jnp.allclose(s_out16.astype(jnp.float32), s_ref16,
                        atol=3e-2, rtol=3e-2), "bf16 scalar mismatch"
    assert jnp.allclose(v_out16.astype(jnp.float32), v_ref16,
                        atol=3e-2, rtol=3e-2), "bf16 vector mismatch"

    print("KERNEL_OK")
</pallas_src>

<mosaic_0001>
module attributes {stable_mosaic.version = 11 : i64} {
  func.func @_gvp_kernel(%arg0: i32, %arg1: memref<16x32xf32, #tpu.memory_space<vmem>>, %arg2: memref<16x48xf32, #tpu.memory_space<vmem>>, %arg3: memref<48x48xf32, #tpu.memory_space<vmem>>, %arg4: memref<32x32xf32, #tpu.memory_space<vmem>>, %arg5: memref<16x32xf32, #tpu.memory_space<vmem>>, %arg6: memref<1x32xf32, #tpu.memory_space<vmem>>, %arg7: memref<48x48xf32, #tpu.memory_space<vmem>>, %arg8: memref<48x48xf32, #tpu.memory_space<vmem>>, %arg9: memref<16x32xf32, #tpu.memory_space<vmem>>, %arg10: memref<16x48xf32, #tpu.memory_space<vmem>>) attributes {dimension_semantics = [#tpu.dimension_semantics<parallel>], iteration_bounds = array<i64: 1>, scalar_prefetch = 0 : i64, scratch_operands = 0 : i64, tpu.core_type = #tpu.core_type<tc>, window_params = [{transform_indices = @transform_0, window_bounds = array<i64: 16, 32>}, {transform_indices = @transform_1, window_bounds = array<i64: 16, 48>}, {pipeline_mode = #tpu.pipeline_mode<synchronous>, transform_indices = @transform_2, window_bounds = array<i64: 48, 48>}, {pipeline_mode = #tpu.pipeline_mode<synchronous>, transform_indices = @transform_3, window_bounds = array<i64: 32, 32>}, {pipeline_mode = #tpu.pipeline_mode<synchronous>, transform_indices = @transform_4, window_bounds = array<i64: 16, 32>}, {pipeline_mode = #tpu.pipeline_mode<synchronous>, transform_indices = @transform_5, window_bounds = array<i64: 1, 32>}, {pipeline_mode = #tpu.pipeline_mode<synchronous>, transform_indices = @transform_6, window_bounds = array<i64: 48, 48>}, {pipeline_mode = #tpu.pipeline_mode<synchronous>, transform_indices = @transform_7, window_bounds = array<i64: 48, 48>}, {transform_indices = @transform_8, window_bounds = array<i64: 16, 32>}, {transform_indices = @transform_9, window_bounds = array<i64: 16, 48>}]} {
    %c0 = arith.constant 0 : index
    %c0_0 = arith.constant 0 : index
    %0 = vector.load %arg1[%c0, %c0_0] : memref<16x32xf32, #tpu.memory_space<vmem>>, vector<16x32xf32>
    %c0_1 = arith.constant 0 : index
    %c0_2 = arith.constant 0 : index
    %1 = vector.load %arg2[%c0_1, %c0_2] : memref<16x48xf32, #tpu.memory_space<vmem>>, vector<16x48xf32>
    %c0_3 = arith.constant 0 : index
    %c0_4 = arith.constant 0 : index
    %2 = vector.load %arg3[%c0_3, %c0_4] : memref<48x48xf32, #tpu.memory_space<vmem>>, vector<48x48xf32>
    %cst = arith.constant dense<0.000000e+00> : vector<16x48xf32>
    %3 = tpu.matmul %1, %2, %cst {dimension_numbers = #tpu.dot_dimension_numbers<[1], [0], [0], [1], [0, 0, 1, 1], [], []>} : vector<16x48xf32>, vector<48x48xf32>, vector<16x48xf32> -> vector<16x48xf32>
    %4 = arith.mulf %3, %3 : vector<16x48xf32>
    %5 = vector.extract_strided_slice %4 {offsets = [0, 0], sizes = [16, 16], strides = [1, 1]} : vector<16x48xf32> to vector<16x16xf32>
    %6 = vector.extract_strided_slice %4 {offsets = [0, 16], sizes = [16, 16], strides = [1, 1]} : vector<16x48xf32> to vector<16x16xf32>
    %7 = arith.addf %5, %6 : vector<16x16xf32>
    %8 = vector.extract_strided_slice %4 {offsets = [0, 32], sizes = [16, 16], strides = [1, 1]} : vector<16x48xf32> to vector<16x16xf32>
    %9 = arith.addf %7, %8 : vector<16x16xf32>
    %cst_5 = arith.constant 9.99999993E-9 : f32
    %10 = vector.broadcast %cst_5 : f32 to vector<16x16xf32>
    %11 = arith.maximumf %9, %10 : vector<16x16xf32>
    %12 = math.sqrt %11 : vector<16x16xf32>
    %c0_6 = arith.constant 0 : index
    %c0_7 = arith.constant 0 : index
    %13 = vector.load %arg4[%c0_6, %c0_7] : memref<32x32xf32, #tpu.memory_space<vmem>>, vector<32x32xf32>
    %cst_8 = arith.constant dense<0.000000e+00> : vector<16x32xf32>
    %14 = tpu.matmul %0, %13, %cst_8 {dimension_numbers = #tpu.dot_dimension_numbers<[1], [0], [0], [1], [0, 0, 1, 1], [], []>} : vector<16x32xf32>, vector<32x32xf32>, vector<16x32xf32> -> vector<16x32xf32>
    %c0_9 = arith.constant 0 : index
    %c0_10 = arith.constant 0 : index
    %15 = vector.load %arg5[%c0_9, %c0_10] : memref<16x32xf32, #tpu.memory_space<vmem>>, vector<16x32xf32>
    %cst_11 = arith.constant dense<0.000000e+00> : vector<16x32xf32>
    %16 = tpu.matmul %12, %15, %cst_11 {dimension_numbers = #tpu.dot_dimension_numbers<[1], [0], [0], [1], [0, 0, 1, 1], [], []>} : vector<16x16xf32>, vector<16x32xf32>, vector<16x32xf32> -> vector<16x32xf32>
    %17 = arith.addf %14, %16 : vector<16x32xf32>
    %c0_12 = arith.constant 0 : index
    %c0_13 = arith.constant 0 : index
    %18 = vector.load %arg6[%c0_12, %c0_13] : memref<1x32xf32, #tpu.memory_space<vmem>>, vector<1x32xf32>
    %19 = vector.broadcast %18 : vector<1x32xf32> to vector<16x32xf32>
    %20 = arith.addf %17, %19 : vector<16x32xf32>
    %cst_14 = arith.constant 0.000000e+00 : f32
    %21 = vector.broadcast %cst_14 : f32 to vector<16x32xf32>
    %22 = arith.maximumf %20, %21 : vector<16x32xf32>
    %c0_15 = arith.constant 0 : index
    %c0_16 = arith.constant 0 : index
    %23 = vector.load %arg9[%c0_15, %c0_16] : memref<16x32xf32, #tpu.memory_space<vmem>>, vector<16x32xf32>
    tpu.vector_store %arg9[%c0_15, %c0_16], %22 {strides = array<i32>} : memref<16x32xf32, #tpu.memory_space<vmem>>, vector<16x32xf32>,
    %c0_17 = arith.constant 0 : index
    %c0_18 = arith.constant 0 : index
    %24 = vector.load %arg7[%c0_17, %c0_18] : memref<48x48xf32, #tpu.memory_space<vmem>>, vector<48x48xf32>
    %cst_19 = arith.constant dense<0.000000e+00> : vector<16x48xf32>
    %25 = tpu.matmul %3, %24, %cst_19 {dimension_numbers = #tpu.dot_dimension_numbers<[1], [0], [0], [1], [0, 0, 1, 1], [], []>} : vector<16x48xf32>, vector<48x48xf32>, vector<16x48xf32> -> vector<16x48xf32>
    %26 = arith.mulf %25, %25 : vector<16x48xf32>
    %27 = vector.extract_strided_slice %26 {offsets = [0, 0], sizes = [16, 16], strides = [1, 1]} : vector<16x48xf32> to vector<16x16xf32>
    %28 = vector.extract_strided_slice %26 {offsets = [0, 16], sizes = [16, 16], strides = [1, 1]} : vector<16x48xf32> to vector<16x16xf32>
    %29 = arith.addf %27, %28 : vector<16x16xf32>
    %30 = vector.extract_strided_slice %26 {offsets = [0, 32], sizes = [16, 16], strides = [1, 1]} : vector<16x48xf32> to vector<16x16xf32>
    %31 = arith.addf %29, %30 : vector<16x16xf32>
    %cst_20 = arith.constant 9.99999993E-9 : f32
    %32 = vector.broadcast %cst_20 : f32 to vector<16x16xf32>
    %33 = arith.maximumf %31, %32 : vector<16x16xf32>
    %34 = math.sqrt %33 : vector<16x16xf32>
    %cst_21 = arith.constant 0.000000e+00 : f32
    %35 = vector.broadcast %cst_21 : f32 to vector<16x16xf32>
    %36 = arith.subf %35, %34 : vector<16x16xf32>
    %37 = math.exp %36 : vector<16x16xf32>
    %cst_22 = arith.constant 1.000000e+00 : f32
    %38 = vector.broadcast %cst_22 : f32 to vector<16x16xf32>
    %39 = arith.addf %38, %37 : vector<16x16xf32>
    %40 = tpu.reciprocal %39 {approx = true} : vector<16x16xf32> -> vector<16x16xf32>
    %41 = tpu.concatenate %40, %40, %40 in 1 : vector<16x16xf32>, vector<16x16xf32>, vector<16x16xf32> -> vector<16x48xf32>
    %42 = arith.mulf %25, %41 : vector<16x48xf32>
    %c0_23 = arith.constant 0 : index
    %c0_24 = arith.constant 0 : index
    %43 = vector.load %arg8[%c0_23, %c0_24] : memref<48x48xf32, #tpu.memory_space<vmem>>, vector<48x48xf32>
    %cst_25 = arith.constant dense<0.000000e+00> : vector<16x48xf32>
    %44 = tpu.matmul %42, %43, %cst_25 {dimension_numbers = #tpu.dot_dimension_numbers<[1], [0], [0], [1], [0, 0, 1, 1], [], []>} : vector<16x48xf32>, vector<48x48xf32>, vector<16x48xf32> -> vector<16x48xf32>
    %c0_26 = arith.constant 0 : index
    %c0_27 = arith.constant 0 : index
    %45 = vector.load %arg10[%c0_26, %c0_27] : memref<16x48xf32, #tpu.memory_space<vmem>>, vector<16x48xf32>
    tpu.vector_store %arg10[%c0_26, %c0_27], %44 {strides = array<i32>} : memref<16x48xf32, #tpu.memory_space<vmem>>, vector<16x48xf32>,
    return
  }
  func.func @transform_0(%arg0: i32) -> (i32, i32) {
    %c0_i32 = arith.constant 0 : i32
    %c0_i32_0 = arith.constant 0 : i32
    return %arg0, %c0_i32 : i32, i32
  }
  func.func @transform_1(%arg0: i32) -> (i32, i32) {
    %c0_i32 = arith.constant 0 : i32
    %c0_i32_0 = arith.constant 0 : i32
    return %arg0, %c0_i32 : i32, i32
  }
  func.func @transform_2(%arg0: i32) -> (i32, i32) {
    %c0_i32 = arith.constant 0 : i32
    %c0_i32_0 = arith.constant 0 : i32
    %c0_i32_1 = arith.constant 0 : i32
    return %c0_i32, %c0_i32_0 : i32, i32
  }
  func.func @transform_3(%arg0: i32) -> (i32, i32) {
    %c0_i32 = arith.constant 0 : i32
    %c0_i32_0 = arith.constant 0 : i32
    %c0_i32_1 = arith.constant 0 : i32
    return %c0_i32, %c0_i32_0 : i32, i32
  }
  func.func @transform_4(%arg0: i32) -> (i32, i32) {
    %c0_i32 = arith.constant 0 : i32
    %c0_i32_0 = arith.constant 0 : i32
    %c0_i32_1 = arith.constant 0 : i32
    return %c0_i32, %c0_i32_0 : i32, i32
  }
  func.func @transform_5(%arg0: i32) -> (i32, i32) {
    %c0_i32 = arith.constant 0 : i32
    %c0_i32_0 = arith.constant 0 : i32
    %c0_i32_1 = arith.constant 0 : i32
    return %c0_i32, %c0_i32_0 : i32, i32
  }
  func.func @transform_6(%arg0: i32) -> (i32, i32) {
    %c0_i32 = arith.constant 0 : i32
    %c0_i32_0 = arith.constant 0 : i32
    %c0_i32_1 = arith.constant 0 : i32
    return %c0_i32, %c0_i32_0 : i32, i32
  }
  func.func @transform_7(%arg0: i32) -> (i32, i32) {
    %c0_i32 = arith.constant 0 : i32
    %c0_i32_0 = arith.constant 0 : i32
    %c0_i32_1 = arith.constant 0 : i32
    return %c0_i32, %c0_i32_0 : i32, i32
  }
  func.func @transform_8(%arg0: i32) -> (i32, i32) {
    %c0_i32 = arith.constant 0 : i32
    %c0_i32_0 = arith.constant 0 : i32
    return %arg0, %c0_i32 : i32, i32
  }
  func.func @transform_9(%arg0: i32) -> (i32, i32) {
    %c0_i32 = arith.constant 0 : i32
    %c0_i32_0 = arith.constant 0 : i32
    return %arg0, %c0_i32 : i32, i32
  }
}

</mosaic_0001>

<bundles_post_ra>
// kernel: tpu_custom_call.1
= control target key start
LH: loop header
LB: loop body
LE: loop exit
PB: predicated region body
PF: predicated region fallthrough
CT: control target
= control target key end

     0   :  { %15 = vsyncpa [#allocation3], 0  ;;  %s930_s0 = inlined_call_operand.hbm [shape: f32[16,32], index: 0, kind: input, shape index: {}]   ;;  %s931_s1 = inlined_call_operand.hbm [shape: f32[16,48], index: 1, kind: input, shape index: {}]   ;;  %s932_s2 = inlined_call_operand.hbm [shape: f32[48,48], index: 2, kind: input, shape index: {}]   ;;  %s933_s3 = inlined_call_operand.hbm [shape: f32[32,32], index: 3, kind: input, shape index: {}]   ;;  %s934_s4 = inlined_call_operand.hbm [shape: f32[16,32], index: 4, kind: input, shape index: {}]   ;;  %s935_s5 = inlined_call_operand.vmem [shape: f32[1,32], index: 5, kind: input, shape index: {}]   ;;  %s936_s6 = inlined_call_operand.hbm [shape: f32[48,48], index: 6, kind: input, shape index: {}]   ;;  %s937_s7 = inlined_call_operand.hbm [shape: f32[48,48], index: 7, kind: input, shape index: {}]   ;;  %s938_s8 = inlined_call_operand.hbm [shape: f32[16,32], index: 8, kind: output, shape index: {0}]   ;;  %s939_s9 = inlined_call_operand.hbm [shape: f32[16,48], index: 9, kind: output, shape index: {1}]  }
   0x1   :  { %16 = vsyncpa [#allocation6], 0 }
   0x2   :  { %17 = vsyncpa [#allocation9], 0 }
   0x3   :  { %18 = vsyncpa [#allocation12], 0 }
   0x4   :  { %19 = vsyncpa [#allocation4], 0 }
   0x5   :  { %20 = vsyncpa [#allocation16], 0  ;;  %s38_s11 = sshll.u32 %s931_s1, 4  ;;  %s768_s12 = smov [#allocation5]   ;;  %s39_s11 = int_to_ptr.hbm [resolvable:$true] %s38_s11 }
   0x6   :  { %s40_s13 = sshll.u32 %s768_s12, 4  ;;  %s64_s16 = sshll.u32 %s933_s3, 4  ;;  %s41_s13 = int_to_ptr.vmem [resolvable:$true] %s40_s13  ;;  %s65_s16 = int_to_ptr.hbm [resolvable:$true] %s64_s16 }
   0x7   :  { %s769_s17 = smov 128   ;;  %s770_s18 = smov 8  }
   0x8   :  { %46 = dma.hbm_to_vmem [thread:$0]  %s39_s11, 256, %s41_s13, [#allocation6], %s769_s17, %s769_s17, %s770_s18  }
   0x9   :  { %s771_s19 = smov [#allocation8]   ;;  %s92_s1 = sshll.u32 %s936_s6, 4  ;;  %s93_s1 = int_to_ptr.hbm [resolvable:$true] %s92_s1 }
   0xa   :  { %s66_s20 = sshll.u32 %s771_s19, 4  ;;  %s25_s24 = sshll.u32 %s930_s0, 4  ;;  %s67_s20 = int_to_ptr.vmem [resolvable:$true] %s66_s20  ;;  %s26_s24 = int_to_ptr.hbm [resolvable:$true] %s25_s24 }
   0xb   :  { %72 = dma.hbm_to_vmem [thread:$0]  %s65_s16, 512, %s67_s20, [#allocation9], %s769_s17, %s769_s17, %s770_s18  }
   0xc   :  { %s772_s25 = smov [#allocation11]   ;;  %s773_s27 = smov [#allocation2]  }
   0xd   :  { %s94_s26 = sshll.u32 %s772_s25, 4  ;;  %s27_s6 = sshll.u32 %s773_s27, 4  ;;  %s95_s26 = int_to_ptr.vmem [resolvable:$true] %s94_s26  ;;  %s28_s6 = int_to_ptr.vmem [resolvable:$true] %s27_s6 }
   0xe   :  { %100 = dma.hbm_to_vmem [thread:$0]  %s93_s1, 768, %s95_s26, [#allocation12], %s769_s17, %s769_s17, %s770_s18  }
   0xf   :  { %s51_s30 = sshll.u32 %s932_s2, 4  ;;  %s77_s11 = sshll.u32 %s934_s4, 4  ;;  %s52_s30 = int_to_ptr.hbm [resolvable:$true] %s51_s30  ;;  %s78_s11 = int_to_ptr.hbm [resolvable:$true] %s77_s11 }
  0x10   :  { %33 = dma.hbm_to_vmem [thread:$0]  %s26_s24, 256, %s28_s6, [#allocation3], %s769_s17, %s769_s17, %s770_s18  }
  0x11   :  { %s774_s12 = smov [#allocation7]   ;;  %s775_s14 = smov [#allocation10]  }
  0x12   :  { %s53_s13 = sshll.u32 %s774_s12, 4  ;;  %s79_s2 = sshll.u32 %s775_s14, 4  ;;  %s54_s13 = int_to_ptr.vmem [resolvable:$true] %s53_s13  ;;  %s80_s2 = int_to_ptr.vmem [resolvable:$true] %s79_s2 }
  0x13   :  { %59 = dma.hbm_to_vmem [thread:$0]  %s52_s30, 768, %s54_s13, [#allocation6], %s769_s17, %s769_s17, %s770_s18  }
  0x14   :  { %s105_s19 = sshll.u32 %s937_s7, 4  ;;  %s776_s4 = smov [#allocation13]   ;;  %s106_s19 = int_to_ptr.hbm [resolvable:$true] %s105_s19 }
  0x15   :  { %85 = dma.hbm_to_vmem [thread:$0]  %s78_s11, 256, %s80_s2, [#allocation9], %s769_s17, %s769_s17, %s770_s18  }
  0x16   :  { %s107_s20 = sshll.u32 %s776_s4, 4  ;;  %s108_s20 = int_to_ptr.vmem [resolvable:$true] %s107_s20 }
  0x17   :  { %113 = dma.hbm_to_vmem [thread:$0]  %s106_s19, 768, %s108_s20, [#allocation12], %s769_s17, %s769_s17, %s770_s18  }
  0x18   :  { %756 = dma.done.wait [#allocation3], 256  }
  0x19   :  { %757 = vsyncadd [#allocation3], 4294967040 }
  0x1a   :  { %758 = dma.done.wait [#allocation6], 1024  }
  0x1b   :  { %759 = vsyncadd [#allocation6], 4294966272 }
  0x1c   :  { %760 = dma.done.wait [#allocation9], 768  }
  0x1d   :  { %761 = vsyncadd [#allocation9], 4294966528 }
  0x1e   :  { %762 = dma.done.wait [#allocation12], 1536  }
  0x1f   :  { %763 = vsyncadd [#allocation12], 4294965760  ;;  %v151_v0 = vld [vmem:[#allocation7 + $0x28] sm:$0xff]  ;;  %v150_v1 = vld [vmem:[#allocation7 + $0x20] sm:$0xff]  ;;  %vm152_vm0 = vcmask 392192   ;;  %s777_s7 = smov 112  }
  0x20   :  { %169 = vmatpush.msra.mxu0 %v151_v0  ;;  %v149_v2 = vld [vmem:[#allocation7 + $0x18] sm:$0xff]  ;;  %v309_v3 = vld [vmem:[#allocation11 + $0x28] sm:$0xff]  ;;  %v308_v4 = vld [vmem:[#allocation11 + $0x20] sm:$0xff]  ;;  %s778_s21 = smov 96   ;;  %vm264_vm1 = vcmask 261120   ;;  %vm234_vm3 = vcmask 130048  }
  0x21   :  { %326 = vmatpush.msra.mxu3 %v309_v3  ;;  %v148_v5 = vld [vmem:[#allocation7 + $0x10] sm:$0xff]  ;;  %v307_v6 = vld [vmem:[#allocation11 + $0x18] sm:$0xff]  ;;  %v147_v7 = vld [vmem:[#allocation7 + $0x8] sm:$0xff]  ;;  %s780_s3 = smov 32   ;;  %s781_s23 = smov [#allocation14]  }
  0x22   :  { %170 = vmatpush.msra.mxu0 %v150_v1  ;;  %v306_v8 = vld [vmem:[#allocation11 + $0x10] sm:$0xff]  ;;  %v146_v9 = vld [vmem:[#allocation7] sm:$0xff]  ;;  %v305_v10 = vld [vmem:[#allocation11 + $0x8] sm:$0xff]  ;;  %s456_s24 = sshll.u32 %s781_s23, 4  ;;  %s458_s27 = sshll.u32 %s938_s8, 4  ;;  %s457_s24 = int_to_ptr.vmem [resolvable:$true] %s456_s24  ;;  %s459_s27 = int_to_ptr.hbm [resolvable:$true] %s458_s27 }
  0x23   :  { %327 = vmatpush.msra.mxu3 %v308_v4  ;;  %v144_v11 = vld [vmem:[#allocation5] sm:$0xff]  ;;  %v145_v12 = vld [vmem:[#allocation5 + $0x8] sm:$0xff]  ;;  %v304_v13 = vld [vmem:[#allocation11] sm:$0xff]  ;;  %s782_s6 = smov [#allocation15]   ;;  %s471_s0 = sshll.u32 %s939_s9, 4  ;;  %s472_s0 = int_to_ptr.hbm [resolvable:$true] %s471_s0 }
  0x24   :  { %171 = vmatpush.msra.mxu0 %v149_v2  ;;  %v231_v17 = vld [vmem:[#allocation8 + $0x18] sm:$0xff]  ;;  %v230_v18 = vld [vmem:[#allocation8 + $0x10] sm:$0xff]  ;;  %v233_v19 = vld [vmem:[#allocation10 + $0x8] sm:$0xff]  ;;  %s469_s28 = sshll.u32 %s782_s6, 4  ;;  %s470_s28 = int_to_ptr.vmem [resolvable:$true] %s469_s28 }
  0x25   :  { %328 = vmatpush.msra.mxu3 %v307_v6  ;;  %283 = vmatpush.msra.mxu2 %v231_v17  ;;  %v229_v20 = vld [vmem:[#allocation8 + $0x8] sm:$0xff]  ;;  %v232_v21 = vld [vmem:[#allocation10] sm:$0xff]  ;;  %v142_v23 = vld [vmem:[#allocation2] sm:$0xff] }
  0x26   :  { %172 = vmatpush.msra.mxu0 %v148_v5  ;;  %255 = vmatpush.msra.mxu1 %v233_v19  ;;  %v228_v22 = vld [vmem:[#allocation8] sm:$0xff]  ;;  %v900_v46 = vld [vmem:[%s935_s5] ss:$0 sm:$0xff]  ;;  %v143_v47 = vld [vmem:[#allocation2 + $0x8] sm:$0xff]  ;;  %s779_s5 = smov 16  }
  0x27   :  { %329 = vmatpush.msra.mxu3 %v306_v8  ;;  %284 = vmatpush.msra.mxu2 %v230_v18 }
  0x28   :  { %173 = vmatpush.msra.mxu0 %v147_v7  ;;  %256 = vmatpush.msra.mxu1 %v232_v21 }
  0x29   :  { %330 = vmatpush.msra.mxu3 %v305_v10  ;;  %285 = vmatpush.msra.mxu2 %v229_v20 }
  0x2a   :  { %174 = vmatpush.msra.mxu0 %v146_v9 }
  0x2b   :  { %492 = vmatmul.msk.f32.vlgmr.msra.gmra.mxu0 %vm152_vm0, %v144_v11  ;;  %331 = vmatpush.msra.mxu3 %v304_v13 }
  0x2c   :  { %286 = vmatpush.msra.mxu2 %v228_v22 }
  0x2d   :  { %496 = vmatmul.msk.f32.vlgmr.msra.gmra.mxu2 %vm264_vm1, %v142_v23 }
  0x33   :  { %493 = vmatmul.msk.f32.gmra.mxu0 %vm152_vm0, %v145_v12 }
  0x35   :  { %497 = vmatmul.msk.f32.gmra.mxu2 %vm264_vm1, %v143_v47  ;;  %v418_v47 = vld [vmem:[#allocation13 + $0x18] sm:$0xff] }
  0xa8   :  { %v176_v14 = vpop.f32.mrf.mxu0 }
  0xa9   :  { %v182_v15 = vmul.f32 %v176_v14, %v176_v14  ;;  %498 = vmatmul.msk.f32.vlgmr.msra.gmra.mxu3 %vm152_vm0, %v176_v14 }
  0xab   :  { %186 = vrot.lane.b32.xlu2 %v182_v15, %s777_s7 }
  0xb0   :  { %v179_v16 = vpop.f32.mrf.mxu0  ;;  %v288_v45 = vpop.f32.mrf.mxu2 }
  0xb1   :  { %499 = vmatmul.msk.f32.gmra.mxu3 %vm152_vm0, %v179_v16  ;;  %v183_v43 = vmul.f32 %v179_v16, %v179_v16 }
  0xb3   :  { %194 = vrot.lane.b32.xlu2 %v182_v15, %s778_s21 }
 0x105   :  { %v187_v24 = vpop.permute.xlu2 %186 }
 0x106   :  { %v192_v25 = vadd.f32 %v187_v24, %v182_v15 }
 0x10d   :  { %v195_v26 = vpop.permute.xlu2 %194 }
 0x10e   :  { %v200_v27 = vadd.f32 %v195_v26, %v192_v25 }
 0x110   :  { %v202_v28 = vmax.f32 %v200_v27, 1e-08 }
 0x112   :  { %524 = vrsqrt.f32 %v202_v28  ;;  %vm211_vm2 = vcmp.eq.f32.partialorder %v202_v28, inf  ;;  %v214_v36 = vand.u32 2147483648, %v202_v28  ;;  %vm213_vm4 = vcmp.eq.f32.partialorder %v202_v28, 0.0 }
 0x118   :  { %v525_v29 = vpop.eup %524 }
 0x119   :  { %v205_v30 = vmul.f32 %v525_v29, %v202_v28 }
 0x11b   :  { %v206_v31 = vmul.f32 %v525_v29, %v205_v30 }
 0x11d   :  { %v207_v32 = vmul.f32 0.5, %v206_v31 }
 0x11f   :  { %v208_v33 = vsub.f32 1.5, %v207_v32 }
 0x121   :  { %v209_v34 = vmul.f32 %v525_v29, %v208_v33 }
 0x123   :  { %v210_v35 = vmul.f32 %v209_v34, %v202_v28 }
 0x125   :  { %v212_v37 = vsel %vm211_vm2, %v202_v28, %v210_v35 }
 0x126   :  { %v215_v38 = vsel %vm213_vm4, %v214_v36, %v212_v37 }
 0x127   :  { %494 = vmatmul.msk.f32.vlgmr.msra.gmra.mxu1 %vm234_vm3, %v215_v38 }
 0x12c   :  { %v883_v39 = vpop.f32.mrf.mxu3 }
 0x12d   :  { %v339_v40 = vmul.f32 %v883_v39, %v883_v39 }
 0x12f   :  { %343 = vrot.lane.b32.xlu1 %v339_v40, %s777_s7 }
 0x134   :  { %v888_v41 = vpop.f32.mrf.mxu3 }
 0x135   :  { %v340_v42 = vmul.f32 %v888_v41, %v888_v41 }
 0x137   :  { %351 = vrot.lane.b32.xlu1 %v339_v40, %s778_s21  ;;  %345 = vrot.lane.b32.xlu0 %v340_v42, %s777_s7 }
 0x13f   :  { %353 = vrot.lane.b32.xlu0 %v340_v42, %s778_s21  ;;  %196 = vrot.lane.b32.xlu1 %v183_v43, %s778_s21 }
 0x147   :  { %188 = vrot.lane.b32.xlu0 %v183_v43, %s777_s7 }
 0x1a1   :  { %v344_v44 = vpop.permute.xlu1 %343 }
 0x1a2   :  { %v349_v51 = vadd.f32 %v344_v44, %v339_v40  ;;  %v420_v44 = vld [vmem:[#allocation13 + $0x28] sm:$0xff] }
 0x1a3   :  { %437 = vmatpush.msrb.mxu1 %v420_v44  ;;  %502 = vmatpush.msrb.mxu2 %v420_v44 }
 0x1a4   :  { %v258_v48 = vpop.f32.mrf.mxu1 }
 0x1a5   :  { %v289_v49 = vadd.f32 %v288_v45, %v258_v48  ;;  %v419_v45 = vld [vmem:[#allocation13 + $0x20] sm:$0xff]  ;;  %v417_v48 = vld [vmem:[#allocation13 + $0x10] sm:$0xff] }
 0x1a6   :  { %438 = vmatpush.msrb.mxu1 %v419_v45  ;;  %503 = vmatpush.msrb.mxu2 %v419_v45 }
 0x1a7   :  { %v298_v50 = vadd.f32 %v900_v46, %v289_v49  ;;  %v416_v49 = vld [vmem:[#allocation13 + $0x8] sm:$0xff] }
 0x1a8   :  { %439 = vmatpush.msrb.mxu1 %v418_v47  ;;  %504 = vmatpush.msrb.mxu2 %v418_v47 }
 0x1a9   :  { %v300_v52 = vmax.f32 %v298_v50, 0.0  ;;  %v352_v53 = vpop.permute.xlu1 %351  ;;  %v346_v54 = vpop.permute.xlu0 %345  ;;  %v415_v50 = vld [vmem:[#allocation13] sm:$0xff] }
 0x1aa   :  { %v357_v55 = vadd.f32 %v352_v53, %v349_v51  ;;  %v350_v57 = vadd.f32 %v346_v54, %v340_v42  ;;  %440 = vmatpush.msrb.mxu1 %v417_v48  ;;  %505 = vmatpush.msrb.mxu2 %v417_v48 }
 0x1ab   :  { %302 = vst.msk [vmem:[#allocation14] sm:$0xff] %vm264_vm1, %v300_v52 }
 0x1ac   :  { %v359_v56 = vmax.f32 %v357_v55, 1e-08  ;;  %441 = vmatpush.msrb.mxu1 %v416_v49  ;;  %506 = vmatpush.msrb.mxu2 %v416_v49 }
 0x1ae   :  { %526 = vrsqrt.f32 %v359_v56  ;;  %vm368_vm5 = vcmp.eq.f32.partialorder %v359_v56, inf  ;;  %v371_v12 = vand.u32 2147483648, %v359_v56  ;;  %vm370_vm6 = vcmp.eq.f32.partialorder %v359_v56, 0.0  ;;  %442 = vmatpush.msrb.mxu1 %v415_v50  ;;  %507 = vmatpush.msrb.mxu2 %v415_v50 }
 0x1b1   :  { %v354_v58 = vpop.permute.xlu0 %353  ;;  %v197_v4 = vpop.permute.xlu1 %196 }
 0x1b2   :  { %v358_v59 = vadd.f32 %v354_v58, %v350_v57  ;;  %v291_v57 = vpop.f32.mrf.mxu2 }
 0x1b4   :  { %v527_v60 = vpop.eup %526  ;;  %v360_v61 = vmax.f32 %v358_v59, 1e-08 }
 0x1b5   :  { %v362_v62 = vmul.f32 %v527_v60, %v359_v56 }
 0x1b6   :  { %528 = vrsqrt.f32 %v360_v61  ;;  %vm380_vm7 = vcmp.eq.f32.partialorder %v360_v61, inf  ;;  %v383_v23 = vand.u32 2147483648, %v360_v61  ;;  %vm382_vm8 = vcmp.eq.f32.partialorder %v360_v61, 0.0 }
 0x1b7   :  { %v363_v63 = vmul.f32 %v527_v60, %v362_v62 }
 0x1b9   :  { %v364_v0 = vmul.f32 0.5, %v363_v63  ;;  %v189_v1 = vpop.permute.xlu0 %188 }
 0x1ba   :  { %v193_v2 = vadd.f32 %v189_v1, %v183_v43 }
 0x1bb   :  { %v365_v3 = vsub.f32 1.5, %v364_v0 }
 0x1bc   :  { %v529_v5 = vpop.eup %528  ;;  %v201_v6 = vadd.f32 %v197_v4, %v193_v2 }
 0x1bd   :  { %v374_v7 = vmul.f32 %v529_v5, %v360_v61  ;;  %v366_v8 = vmul.f32 %v527_v60, %v365_v3 }
 0x1be   :  { %v203_v9 = vmax.f32 %v201_v6, 1e-08 }
 0x1bf   :  { %v375_v10 = vmul.f32 %v529_v5, %v374_v7  ;;  %v367_v11 = vmul.f32 %v366_v8, %v359_v56 }
 0x1c0   :  { %530 = vrsqrt.f32 %v203_v9  ;;  %vm223_vm9 = vcmp.eq.f32.partialorder %v203_v9, inf  ;;  %v226_v35 = vand.u32 2147483648, %v203_v9  ;;  %vm225_vm10 = vcmp.eq.f32.partialorder %v203_v9, 0.0 }
 0x1c1   :  { %v376_v13 = vmul.f32 0.5, %v375_v10  ;;  %v369_v14 = vsel %vm368_vm5, %v359_v56, %v367_v11 }
 0x1c2   :  { %v372_v15 = vsel %vm370_vm6, %v371_v12, %v369_v14 }
 0x1c3   :  { %v377_v16 = vsub.f32 1.5, %v376_v13  ;;  %v385_v17 = vsub.f32 0.0, %v372_v15 }
 0x1c5   :  { %v387_v18 = vmul.f32 1.442695, %v385_v17  ;;  %v378_v19 = vmul.f32 %v529_v5, %v377_v16 }
 0x1c6   :  { %v531_v20 = vpop.eup %530 }
 0x1c7   :  { %v217_v21 = vmul.f32 %v531_v20, %v203_v9  ;;  %532 = vpow2.f32 %v387_v18  ;;  %v379_v22 = vmul.f32 %v378_v19, %v360_v61 }
 0x1c9   :  { %v218_v24 = vmul.f32 %v531_v20, %v217_v21  ;;  %v381_v25 = vsel %vm380_vm7, %v360_v61, %v379_v22 }
 0x1ca   :  { %v384_v26 = vsel %vm382_vm8, %v383_v23, %v381_v25 }
 0x1cb   :  { %v219_v27 = vmul.f32 0.5, %v218_v24  ;;  %v386_v28 = vsub.f32 0.0, %v384_v26 }
 0x1cd   :  { %v533_v29 = vpop.eup %532  ;;  %v220_v30 = vsub.f32 1.5, %v219_v27  ;;  %v389_v31 = vmul.f32 1.442695, %v386_v28 }
 0x1ce   :  { %v391_v32 = vadd.f32 1.0, %v533_v29 }
 0x1cf   :  { %v221_v33 = vmul.f32 %v531_v20, %v220_v30  ;;  %534 = vpow2.f32 %v389_v31 }
 0x1d0   :  { %536 = vrcp.f32 %v391_v32 }
 0x1d1   :  { %v222_v34 = vmul.f32 %v221_v33, %v203_v9 }
 0x1d3   :  { %v224_v36 = vsel %vm223_vm9, %v203_v9, %v222_v34 }
 0x1d4   :  { %v227_v37 = vsel %vm225_vm10, %v226_v35, %v224_v36 }
 0x1d5   :  { %v535_v38 = vpop.eup %534  ;;  %495 = vmatmul.msk.f32.gmra.mxu1 %vm234_vm3, %v227_v37 }
 0x1d6   :  { %v537_v40 = vpop.eup %536  ;;  %v392_v42 = vadd.f32 1.0, %v535_v38 }
 0x1d7   :  { %397 = vrot.lane.b32.xlu1 %v537_v40, %s779_s5 }
 0x1d8   :  { %538 = vrcp.f32 %v392_v42 }
 0x1de   :  { %v539_v43 = vpop.eup %538 }
 0x1df   :  { %399 = vrot.lane.b32.xlu2 %v539_v43, %s779_s5  ;;  %405 = vrot.lane.b32.xlu0 %v539_v43, %s780_s3 }
 0x1e7   :  { %403 = vrot.lane.b32.xlu2 %v537_v40, %s780_s3 }
 0x239   :  { %v400_v51 = vpop.permute.xlu2 %399 }
 0x23a   :  { %v410_v58 = vsel %vm234_vm3, %v539_v43, %v400_v51 }
 0x241   :  { %v404_v53 = vpop.permute.xlu2 %403 }
 0x249   :  { %v398_v52 = vpop.permute.xlu1 %397 }
 0x24a   :  { %v409_v54 = vsel %vm234_vm3, %v537_v40, %v398_v52 }
 0x24b   :  { %v411_v55 = vsel %vm264_vm1, %v409_v54, %v404_v53 }
 0x24c   :  { %v413_v56 = vmul.f32 %v411_v55, %v883_v39 }
 0x24e   :  { %500 = vmatmul.msk.f32.vlgmr.msrb.gmra.mxu1 %vm152_vm0, %v413_v56 }
 0x251   :  { %v406_v59 = vpop.permute.xlu0 %405 }
 0x252   :  { %v412_v60 = vsel %vm264_vm1, %v410_v58, %v406_v59  ;;  %v261_v61 = vpop.f32.mrf.mxu1 }
 0x253   :  { %v414_v62 = vmul.f32 %v412_v60, %v888_v41  ;;  %v292_v63 = vadd.f32 %v291_v57, %v261_v61 }
 0x255   :  { %v299_v0 = vadd.f32 %v900_v46, %v292_v63  ;;  %501 = vmatmul.msk.f32.vlgmr.msrb.gmra.mxu2 %vm152_vm0, %v414_v62 }
 0x257   :  { %v301_v1 = vmax.f32 %v299_v0, 0.0 }
 0x259   :  { %303 = vst.msk [vmem:[#allocation14 + $0x8] sm:$0xff] %vm264_vm1, %v301_v1 }
 0x25a   :  { %464 = dma.vmem_to_hbm [thread:$0]  %s457_s24, 256, %s459_s27, [#allocation4], %s769_s17, %s769_s17, %s770_s18  }
 0x2cb   :  { %v444_v39 = vpop.f32.mrf.mxu1 }
 0x2cc   :  { %450 = vst.msk [vmem:[#allocation15] sm:$0xff] %vm152_vm0, %v444_v39 }
 0x2d8   :  { %v447_v41 = vpop.f32.mrf.mxu2 }
 0x2d9   :  { %451 = vst.msk [vmem:[#allocation15 + $0x8] sm:$0xff] %vm152_vm0, %v447_v41 }
 0x2da   :  { %477 = dma.vmem_to_hbm [thread:$0]  %s470_s28, 256, %s472_s0, [#allocation16], %s769_s17, %s769_s17, %s770_s18  }
 0x2db   :  { %764 = dma.done.wait [#allocation4], 256  }
 0x2dc   :  { %765 = vsyncadd [#allocation4], 4294967040 }
 0x2dd   :  { %766 = dma.done.wait [#allocation16], 256  }
 0x2de   :  { %767 = vsyncadd [#allocation16], 4294967040 }
 0x2df   :  { %486 = vsyncpa [#allocation3], 1 }
 0x2e0   :  { %487 = vsyncpa [#allocation6], 1 }
 0x2e1   :  { %488 = vsyncpa [#allocation9], 1 }
 0x2e2   :  { %489 = vsyncpa [#allocation12], 1 }
 0x2e3   :  { %490 = vsyncpa [#allocation4], 1 }
 0x2e4   :  { %491 = vsyncpa [#allocation16], 1 }

</bundles_post_ra>
